<compile_context>
chip_gen: v6e
topology: v6e:2x2x1
jax: 0.10.0
libtpu: 0.0.40
codegen_flags: <defaults>
</compile_context>

<pallas_src>
import math
import functools

import jax
import jax.numpy as jnp
from jax.experimental import pallas as pl
from jax.experimental.pallas import tpu as pltpu


def _round_up(x, m):
    return ((x + m - 1) // m) * m


def _choose_tiling(n):
    """Pick (padded N, row tile tm, reduction tile tk)."""
    n_pad = _round_up(n, 128)
    if n_pad >= 512:
        tm, tk = 256, 512           # conservative: fits scoped VMEM on v5e/v6e/v7x
        n_pad = _round_up(n_pad, 512)
    else:
        tm = tk = n_pad             # small graphs: single tile per axis
    return n_pad, tm, tk


def _gcn_layer_kernel(h_row_ref, adj_ref, h_k_ref, w_ref, norm_ref, bias_ref,
                      out_ref, acc_ref, *, apply_relu):
    k = pl.program_id(1)

    @pl.when(k == 0)
    def _init():
        # identity term of (A + I) @ H  (the "+ h" residual in the reference)
        acc_ref[...] = h_row_ref[...]

    # aggregation: adj tile (bf16 0/1 -> f32 exact) @ H k-tile, f32 accumulation
    acc_ref[...] += jnp.dot(adj_ref[...].astype(jnp.float32), h_k_ref[...],
                            preferred_element_type=jnp.float32)

    @pl.when(k == pl.num_programs(1) - 1)
    def _finalize():
        # feature transform hoisted out of the k loop: runs once per row tile
        hw = jnp.dot(acc_ref[...], w_ref[...], preferred_element_type=jnp.float32)
        out = hw * norm_ref[...] + bias_ref[...]
        if apply_relu:
            out = jnp.maximum(out, 0.0)
        out_ref[...] = out.astype(out_ref.dtype)


def gcn_layer(h_pad, w_pad, adj_pad, norm_pad, bias_pad, apply_relu, tm, tk):
    """One GCNLayer forward on padded operands (dropout = eval-mode identity)."""
    n_pad, f_in_pad = h_pad.shape
    f_out_pad = w_pad.shape[1]
    grid = (n_pad // tm, n_pad // tk)

    kernel = functools.partial(_gcn_layer_kernel, apply_relu=apply_relu)

    flops = 2 * n_pad * n_pad * f_in_pad + 2 * n_pad * f_in_pad * f_out_pad
    bytes_accessed = int(
        adj_pad.size * adj_pad.dtype.itemsize          # adjacency stream (dominant)
        + h_pad.size * 4 * (1 + grid[0])               # h row tiles + k-tile re-fetch
        + n_pad * f_out_pad * 4                        # output
        + w_pad.size * 4 + n_pad * 4 + f_out_pad * 4)  # W, norm, bias

    return pl.pallas_call(
        kernel,
        out_shape=jax.ShapeDtypeStruct((n_pad, f_out_pad), jnp.float32),
        grid_spec=pltpu.PrefetchScalarGridSpec(
            num_scalar_prefetch=0,
            grid=grid,
            in_specs=[
                pl.BlockSpec((tm, f_in_pad), lambda i, k: (i, 0)),        # h row tile
                pl.BlockSpec((tm, tk), lambda i, k: (i, k)),              # adj tile
                pl.BlockSpec((tk, f_in_pad), lambda i, k: (k, 0)),        # h k tile
                pl.BlockSpec((f_in_pad, f_out_pad), lambda i, k: (0, 0)),  # W (resident)
                pl.BlockSpec((tm, 1), lambda i, k: (i, 0)),               # norm
                pl.BlockSpec((1, f_out_pad), lambda i, k: (0, 0)),        # bias
            ],
            out_specs=pl.BlockSpec((tm, f_out_pad), lambda i, k: (i, 0)),
            scratch_shapes=[pltpu.VMEM((tm, f_in_pad), jnp.float32)],
        ),
        compiler_params=pltpu.CompilerParams(
            dimension_semantics=("parallel", "arbitrary")),
        cost_estimate=pl.CostEstimate(
            flops=flops, transcendentals=0, bytes_accessed=bytes_accessed),
    )(h_pad, adj_pad, h_pad, w_pad, norm_pad, bias_pad)


def gcn_forward(adj, features, params):
    """Full GCN.forward: compute norm, pad to lane-dense shapes, run the layer stack."""
    n = adj.shape[0]
    in_dim = features.shape[1]
    out_dim = params[-1][0].shape[1]

    # norm = (in_degree + 1) ** -0.5, with inf -> 0 (dead guard since deg+1 >= 1)
    degs = jnp.sum(adj, axis=1) + 1.0
    norm = jnp.power(degs, -0.5)
    norm = jnp.where(jnp.isinf(norm), 0.0, norm)

    # Pad node count to the tiling and feature dims to multiples of 128 lanes.
    n_pad, tm, tk = _choose_tiling(n)
    adj_p = jnp.zeros((n_pad, n_pad), jnp.bfloat16).at[:n, :n].set(
        adj.astype(jnp.bfloat16))                      # 0/1 values: exact in bf16
    norm_p = jnp.zeros((n_pad, 1), jnp.float32).at[:n, 0].set(norm.astype(jnp.float32))

    f_in_pad0 = _round_up(in_dim, 128)
    h = jnp.zeros((n_pad, f_in_pad0), jnp.float32).at[:n, :in_dim].set(
        features.astype(jnp.float32))

    n_layers = len(params)
    for i, (w, b) in enumerate(params):
        f_in, f_out = w.shape
        f_in_pad = _round_up(f_in, 128)
        f_out_pad = _round_up(f_out, 128)
        w_p = jnp.zeros((f_in_pad, f_out_pad), jnp.float32).at[:f_in, :f_out].set(w)
        b_p = jnp.zeros((1, f_out_pad), jnp.float32).at[:, :f_out].set(
            b.reshape(1, f_out))
        apply_relu = i < n_layers - 1  # last layer has activation=None
        # TODO(synk): nn.Dropout omitted — eval/inference semantics (identity).
        h = gcn_layer(h, w_p, adj_p, norm_p, b_p, apply_relu, tm, tk)

    return h[:n, :out_dim]


def gcn_reference(adj, features, params):
    """Pure-JAX reference matching the PyTorch forward (eval mode)."""
    degs = jnp.sum(adj, axis=1) + 1.0
    norm = jnp.power(degs, -0.5)[:, None]
    h = features
    for i, (w, b) in enumerate(params):
        hw = h @ w
        h = (adj @ hw + hw) * norm + b
        if i < len(params) - 1:
            h = jnp.maximum(h, 0.0)
    return h


def init_params(key, in_dim, hidden_dim, out_dim, num_layers):
    """Deterministic init matching GCNLayer.init_parameters: U(-stdv, stdv), stdv = 1/sqrt(out_feats)."""
    dims = [in_dim] + [hidden_dim] * (num_layers - 1) + [out_dim]
    params = []
    for l in range(num_layers):
        f_in, f_out = dims[l], dims[l + 1]
        stdv = 1.0 / math.sqrt(f_out)
        key, kw, kb = jax.random.split(key, 3)
        w = jax.random.uniform(kw, (f_in, f_out), jnp.float32, minval=-stdv, maxval=stdv)
        b = jax.random.uniform(kb, (1, f_out), jnp.float32, minval=-stdv, maxval=stdv)
        params.append((w, b))
    return params


if __name__ == "__main__":
    key = jax.random.PRNGKey(0)
    k_adj, k_feat, k_params = jax.random.split(key, 3)

    # Small synthetic graph: N=16 nodes, in_dim=8, hidden=32, out_dim=8, 3 layers.
    N, IN_DIM, HIDDEN_DIM, OUT_DIM, NUM_LAYERS = 16, 8, 32, 8, 3

    # Deterministic random adjacency (edge j -> i), no self loops in the graph itself.
    adj = (jax.random.uniform(k_adj, (N, N)) < 0.3).astype(jnp.float32)
    adj = adj * (1.0 - jnp.eye(N, dtype=jnp.float32))

    features = jax.random.normal(k_feat, (N, IN_DIM), dtype=jnp.float32)

    params = init_params(k_params, IN_DIM, HIDDEN_DIM, OUT_DIM, NUM_LAYERS)

    out = gcn_forward(adj, features, params)
    out = jax.block_until_ready(out)
    assert out.shape == (N, OUT_DIM), out.shape
    assert jnp.all(jnp.isfinite(out))

    # Correctness check against the plain-JAX reference (re-association drift ~1e-6).
    ref = gcn_reference(adj, features, params)
    assert jnp.allclose(out, ref, rtol=2e-4, atol=2e-4), jnp.max(jnp.abs(out - ref))

    print("KERNEL_OK")
</pallas_src>

<mosaic_0001>
module attributes {stable_mosaic.version = 11 : i64} {
  func.func @_gcn_layer_kernel(%arg0: i32, %arg1: i32, %arg2: memref<128x128xf32, #tpu.memory_space<vmem>>, %arg3: memref<128x128xbf16, #tpu.memory_space<vmem>>, %arg4: memref<128x128xf32, #tpu.memory_space<vmem>>, %arg5: memref<128x128xf32, #tpu.memory_space<vmem>>, %arg6: memref<128x1xf32, #tpu.memory_space<vmem>>, %arg7: memref<1x128xf32, #tpu.memory_space<vmem>>, %arg8: memref<128x128xf32, #tpu.memory_space<vmem>>, %arg9: memref<128x128xf32, #tpu.memory_space<vmem>>) attributes {dimension_semantics = [#tpu.dimension_semantics<parallel>, #tpu.dimension_semantics<arbitrary>], iteration_bounds = array<i64: 1, 1>, scalar_prefetch = 0 : i64, scratch_operands = 1 : i64, tpu.core_type = #tpu.core_type<tc>, window_params = [{transform_indices = @transform_0, window_bounds = array<i64: 128, 128>}, {transform_indices = @transform_1, window_bounds = array<i64: 128, 128>}, {transform_indices = @transform_2, window_bounds = array<i64: 128, 128>}, {pipeline_mode = #tpu.pipeline_mode<synchronous>, transform_indices = @transform_3, window_bounds = array<i64: 128, 128>}, {transform_indices = @transform_4, window_bounds = array<i64: 128, 1>}, {pipeline_mode = #tpu.pipeline_mode<synchronous>, transform_indices = @transform_5, window_bounds = array<i64: 1, 128>}, {transform_indices = @transform_6, window_bounds = array<i64: 128, 128>}]} {
    %c0_i32 = arith.constant 0 : i32
    %0 = arith.cmpi eq, %arg1, %c0_i32 : i32
    %1 = arith.extui %0 : i1 to i32
    %c0_i32_0 = arith.constant 0 : i32
    %2 = arith.cmpi ne, %1, %c0_i32_0 : i32
    scf.if %2 {
      %c0_10 = arith.constant 0 : index
      %c0_11 = arith.constant 0 : index
      %13 = vector.load %arg2[%c0_10, %c0_11] : memref<128x128xf32, #tpu.memory_space<vmem>>, vector<128x128xf32>
      %c0_12 = arith.constant 0 : index
      %c0_13 = arith.constant 0 : index
      %14 = vector.load %arg9[%c0_12, %c0_13] : memref<128x128xf32, #tpu.memory_space<vmem>>, vector<128x128xf32>
      tpu.vector_store %arg9[%c0_12, %c0_13], %13 {strides = array<i32>} : memref<128x128xf32, #tpu.memory_space<vmem>>, vector<128x128xf32>,
    } else {
    }
    %c0 = arith.constant 0 : index
    %c0_1 = arith.constant 0 : index
    %3 = vector.load %arg9[%c0, %c0_1] : memref<128x128xf32, #tpu.memory_space<vmem>>, vector<128x128xf32>
    %c0_2 = arith.constant 0 : index
    %c0_3 = arith.constant 0 : index
    %4 = vector.load %arg3[%c0_2, %c0_3] : memref<128x128xbf16, #tpu.memory_space<vmem>>, vector<128x128xbf16>
    %5 = arith.extf %4 : vector<128x128xbf16> to vector<128x128xf32>
    %c0_4 = arith.constant 0 : index
    %c0_5 = arith.constant 0 : index
    %6 = vector.load %arg4[%c0_4, %c0_5] : memref<128x128xf32, #tpu.memory_space<vmem>>, vector<128x128xf32>
    %cst = arith.constant dense<0.000000e+00> : vector<128x128xf32>
    %7 = tpu.matmul %5, %6, %cst {dimension_numbers = #tpu.dot_dimension_numbers<[1], [0], [0], [1], [0, 0, 1, 1], [], []>} : vector<128x128xf32>, vector<128x128xf32>, vector<128x128xf32> -> vector<128x128xf32>
    %8 = arith.addf %3, %7 : vector<128x128xf32>
    %c0_6 = arith.constant 0 : index
    %c0_7 = arith.constant 0 : index
    %9 = vector.load %arg9[%c0_6, %c0_7] : memref<128x128xf32, #tpu.memory_space<vmem>>, vector<128x128xf32>
    tpu.vector_store %arg9[%c0_6, %c0_7], %8 {strides = array<i32>} : memref<128x128xf32, #tpu.memory_space<vmem>>, vector<128x128xf32>,
    %c0_i32_8 = arith.constant 0 : i32
    %10 = arith.cmpi eq, %arg1, %c0_i32_8 : i32
    %11 = arith.extui %10 : i1 to i32
    %c0_i32_9 = arith.constant 0 : i32
    %12 = arith.cmpi ne, %11, %c0_i32_9 : i32
    scf.if %12 {
      %c0_10 = arith.constant 0 : index
      %c0_11 = arith.constant 0 : index
      %13 = vector.load %arg9[%c0_10, %c0_11] : memref<128x128xf32, #tpu.memory_space<vmem>>, vector<128x128xf32>
      %c0_12 = arith.constant 0 : index
      %c0_13 = arith.constant 0 : index
      %14 = vector.load %arg5[%c0_12, %c0_13] : memref<128x128xf32, #tpu.memory_space<vmem>>, vector<128x128xf32>
      %cst_14 = arith.constant dense<0.000000e+00> : vector<128x128xf32>
      %15 = tpu.matmul %13, %14, %cst_14 {dimension_numbers = #tpu.dot_dimension_numbers<[1], [0], [0], [1], [0, 0, 1, 1], [], []>} : vector<128x128xf32>, vector<128x128xf32>, vector<128x128xf32> -> vector<128x128xf32>
      %c0_15 = arith.constant 0 : index
      %c0_16 = arith.constant 0 : index
      %16 = vector.load %arg6[%c0_15, %c0_16] : memref<128x1xf32, #tpu.memory_space<vmem>>, vector<128x1xf32>
      %17 = vector.broadcast %16 : vector<128x1xf32> to vector<128x128xf32>
      %18 = arith.mulf %15, %17 : vector<128x128xf32>
      %c0_17 = arith.constant 0 : index
      %c0_18 = arith.constant 0 : index
      %19 = vector.load %arg7[%c0_17, %c0_18] : memref<1x128xf32, #tpu.memory_space<vmem>>, vector<1x128xf32>
      %20 = vector.broadcast %19 : vector<1x128xf32> to vector<128x128xf32>
      %21 = arith.addf %18, %20 : vector<128x128xf32>
      %cst_19 = arith.constant 0.000000e+00 : f32
      %22 = vector.broadcast %cst_19 : f32 to vector<128x128xf32>
      %23 = arith.maximumf %21, %22 : vector<128x128xf32>
      %c0_20 = arith.constant 0 : index
      %c0_21 = arith.constant 0 : index
      %24 = vector.load %arg8[%c0_20, %c0_21] : memref<128x128xf32, #tpu.memory_space<vmem>>, vector<128x128xf32>
      tpu.vector_store %arg8[%c0_20, %c0_21], %23 {strides = array<i32>} : memref<128x128xf32, #tpu.memory_space<vmem>>, vector<128x128xf32>,
    } else {
    }
    return
  }
  func.func @transform_0(%arg0: i32, %arg1: i32) -> (i32, i32) {
    %c0_i32 = arith.constant 0 : i32
    %c0_i32_0 = arith.constant 0 : i32
    return %arg0, %c0_i32 : i32, i32
  }
  func.func @transform_1(%arg0: i32, %arg1: i32) -> (i32, i32) {
    %c0_i32 = arith.constant 0 : i32
    return %arg0, %arg1 : i32, i32
  }
  func.func @transform_2(%arg0: i32, %arg1: i32) -> (i32, i32) {
    %c0_i32 = arith.constant 0 : i32
    %c0_i32_0 = arith.constant 0 : i32
    return %arg1, %c0_i32 : i32, i32
  }
  func.func @transform_3(%arg0: i32, %arg1: i32) -> (i32, i32) {
    %c0_i32 = arith.constant 0 : i32
    %c0_i32_0 = arith.constant 0 : i32
    %c0_i32_1 = arith.constant 0 : i32
    return %c0_i32, %c0_i32_0 : i32, i32
  }
  func.func @transform_4(%arg0: i32, %arg1: i32) -> (i32, i32) {
    %c0_i32 = arith.constant 0 : i32
    %c0_i32_0 = arith.constant 0 : i32
    return %arg0, %c0_i32 : i32, i32
  }
  func.func @transform_5(%arg0: i32, %arg1: i32) -> (i32, i32) {
    %c0_i32 = arith.constant 0 : i32
    %c0_i32_0 = arith.constant 0 : i32
    %c0_i32_1 = arith.constant 0 : i32
    return %c0_i32, %c0_i32_0 : i32, i32
  }
  func.func @transform_6(%arg0: i32, %arg1: i32) -> (i32, i32) {
    %c0_i32 = arith.constant 0 : i32
    %c0_i32_0 = arith.constant 0 : i32
    return %arg0, %c0_i32 : i32, i32
  }
}

</mosaic_0001>

<bundles_post_ra>
// kernel: tpu_custom_call.1
= control target key start
LH: loop header
LB: loop body
LE: loop exit
PB: predicated region body
PF: predicated region fallthrough
CT: control target
= control target key end

     0   :  { %11 = vsyncpa [#allocation4], 0  ;;  %s1206_s0 = inlined_call_operand.vmem [shape: f32[128,128], index: 0, kind: input, shape index: {}]   ;;  %s1207_s1 = inlined_call_operand.hbm [shape: bf16[128,128], index: 1, kind: input, shape index: {}]   ;;  %s1208_s2 = inlined_call_operand.hbm [shape: f32[128,128], index: 2, kind: input, shape index: {}]   ;;  %s1209_s3 = inlined_call_operand.hbm [shape: f32[128,128], index: 3, kind: input, shape index: {}]   ;;  %s1210_s4 = inlined_call_operand.vmem [shape: f32[128,1], index: 4, kind: input, shape index: {}]   ;;  %s1211_s5 = inlined_call_operand.vmem [shape: f32[1,128], index: 5, kind: input, shape index: {}]   ;;  %s1212_s6 = inlined_call_operand.hbm [shape: f32[128,128], index: 6, kind: output, shape index: {}]  }
   0x1   :  { %12 = vsyncpa [#allocation7], 0 }
   0x2   :  { %13 = vsyncpa [#allocation5], 0  ;;  %s1020_s21 = smov [#allocation6]  }
   0x3   :  { %s33_s22 = sshll.u32 %s1020_s21, 4  ;;  %s34_s22 = int_to_ptr.vmem [resolvable:$true] %s33_s22 }
   0x4   :  { %s942_s23 = scalar_lea.vmem %s34_s22, 2048  ;;  %p947_p1 = scmp.lt.s32.totalorder %s34_s22, %s34_s22 }
   0x5   :  { %p943_p0 = scmp.ne.s32.totalorder %s34_s22, %s942_s23  ;;  %p948_p2 = scmp.lt.s32.totalorder %s942_s23, %s942_s23 }
   0x7   :  { %p949_p3 = por %p948_p2, %p947_p1 }
   0x9   :  { %p950_p4 = pnand %p949_p3, %p943_p0 }
   0xb   :  { %953 = shalt.err (!%p950_p4)
}
   0xc   :  { %s1021_s24 = smov 128   ;;  %s1022_s25 = smov 8  }
   0xd   :  { %39 = dma.hbm_to_vmem [thread:$0]  %s1208_s2, 2048, %s34_s22, [#allocation7], %s1021_s24, %s1021_s24, %s1022_s25  }
   0xe   :  { %s1023_s28 = smov [#allocation3]  }
   0xf   :  { %s21_s29 = sshll.u32 %s1023_s28, 4  ;;  %s22_s29 = int_to_ptr.vmem [resolvable:$true] %s21_s29 }
  0x10   :  { %s962_s30 = scalar_lea.vmem %s22_s29, 1024  ;;  %p967_p6 = scmp.lt.s32.totalorder %s22_s29, %s22_s29 }
  0x11   :  { %p963_p5 = scmp.ne.s32.totalorder %s22_s29, %s962_s30  ;;  %p968_p7 = scmp.lt.s32.totalorder %s962_s30, %s962_s30 }
  0x13   :  { %p969_p8 = por %p968_p7, %p967_p6 }
  0x15   :  { %p970_p9 = pnand %p969_p8, %p963_p5 }
  0x17   :  { %973 = shalt.err (!%p970_p9)
}
  0x18   :  { %s1024_s7 = smov 64   ;;  %s1025_s8 = smov 4  }
  0x19   :  { %27 = dma.hbm_to_vmem [thread:$0]  %s1207_s1, 1024, %s22_s29, [#allocation4], %s1024_s7, %s1024_s7, %s1025_s8  }
  0x1a   :  { %s1026_s11 = smov [#allocation8]  }
  0x1b   :  { %s45_s12 = sshll.u32 %s1026_s11, 4  ;;  %s46_s12 = int_to_ptr.vmem [resolvable:$true] %s45_s12 }
  0x1c   :  { %s982_s2 = scalar_lea.vmem %s46_s12, 2048  ;;  %p987_p11 = scmp.lt.s32.totalorder %s46_s12, %s46_s12 }
  0x1d   :  { %p983_p10 = scmp.ne.s32.totalorder %s46_s12, %s982_s2  ;;  %p988_p12 = scmp.lt.s32.totalorder %s982_s2, %s982_s2 }
  0x1f   :  { %p989_p13 = por %p988_p12, %p987_p11 }
  0x21   :  { %p990_p0 = pnand %p989_p13, %p983_p10 }
  0x23   :  { %993 = shalt.err (!%p990_p0)
}
  0x24   :  { %51 = dma.hbm_to_vmem [thread:$0]  %s1209_s3, 2048, %s46_s12, [#allocation7], %s1021_s24, %s1021_s24, %s1022_s25  }
  0x25   :  { %1014 = dma.done.wait [#allocation4], 1024  }
  0x26   :  { %1015 = vsyncadd [#allocation4], 4294966272 }
  0x27   :  { %1016 = dma.done.wait [#allocation7], 4096  }
  0x28   :  { %1017 = vsyncadd [#allocation7], 4294963200  ;;  %v164_v0 = vld [vmem:[#allocation6 + $0x78] sm:$0xff]  ;;  %v163_v1 = vld [vmem:[#allocation6 + $0x70] sm:$0xff]  ;;  %v1027_v58 = vmov 0  }
  0x29   :  { %811 = vmatprep.subr.mxu0 %v164_v0  ;;  %v162_v2 = vld [vmem:[#allocation6 + $0x68] sm:$0xff]  ;;  %v161_v3 = vld [vmem:[#allocation6 + $0x60] sm:$0xff]  ;;  %v160_v5 = vld [vmem:[#allocation6 + $0x58] sm:$0xff]  ;;  %933 = vset.pattern.permute.xlu1 %v1027_v58 }
  0x2a   :  { %812 = vmatpush3.msra.mxu0 %v164_v0  ;;  %v1079_v4 = vld [vmem:[#allocation3] sm:$0xff]   ;;  %v159_v7 = vld [vmem:[#allocation6 + $0x50] sm:$0xff]  ;;  %v376_v8 = vld [vmem:[#allocation8 + $0x78] sm:$0xff]  ;;  %932 = vset.pattern.permute.xlu0 %v1027_v58 }
  0x2b   :  { %813 = vmatprep.subr.mxu0 %v163_v1  ;;  %v710_v6 = vunpack.c.l.bf16 %v1079_v4  ;;  %v375_v9 = vld [vmem:[#allocation8 + $0x70] sm:$0xff]  ;;  %867 = vmatprep.subr.mxu1 %v376_v8  ;;  %v158_v10 = vld [vmem:[#allocation6 + $0x48] sm:$0xff]  ;;  %v157_v12 = vld [vmem:[#allocation6 + $0x40] sm:$0xff]  ;;  %v711_v31 = vunpack.c.h.bf16 %v1079_v4 }
  0x2c   :  { %814 = vmatpush3.msra.mxu0 %v163_v1  ;;  %868 = vmatpush3.msra.mxu1 %v376_v8  ;;  %v374_v11 = vld [vmem:[#allocation8 + $0x68] sm:$0xff]  ;;  %v373_v13 = vld [vmem:[#allocation8 + $0x60] sm:$0xff]  ;;  %v156_v14 = vld [vmem:[#allocation6 + $0x38] sm:$0xff] }
  0x2d   :  { %815 = vmatprep.subr.mxu0 %v162_v2  ;;  %843 = vmatprep.mubr.f32.mxu0 %v710_v6  ;;  %v372_v15 = vld [vmem:[#allocation8 + $0x58] sm:$0xff]  ;;  %v155_v16 = vld [vmem:[#allocation6 + $0x30] sm:$0xff]  ;;  %v154_v18 = vld [vmem:[#allocation6 + $0x28] sm:$0xff] }
  0x2e   :  { %816 = vmatpush3.msra.mxu0 %v162_v2  ;;  %869 = vmatprep.subr.mxu1 %v375_v9  ;;  %v371_v17 = vld [vmem:[#allocation8 + $0x50] sm:$0xff]  ;;  %v370_v19 = vld [vmem:[#allocation8 + $0x48] sm:$0xff]  ;;  %v153_v20 = vld [vmem:[#allocation6 + $0x20] sm:$0xff] }
  0x2f   :  { %817 = vmatprep.subr.mxu0 %v161_v3  ;;  %870 = vmatpush3.msra.mxu1 %v375_v9  ;;  %v369_v21 = vld [vmem:[#allocation8 + $0x40] sm:$0xff]  ;;  %v152_v22 = vld [vmem:[#allocation6 + $0x18] sm:$0xff]  ;;  %v151_v24 = vld [vmem:[#allocation6 + $0x10] sm:$0xff] }
  0x30   :  { %818 = vmatpush3.msra.mxu0 %v161_v3  ;;  %871 = vmatprep.subr.mxu1 %v374_v11  ;;  %v368_v23 = vld [vmem:[#allocation8 + $0x38] sm:$0xff]  ;;  %v367_v25 = vld [vmem:[#allocation8 + $0x30] sm:$0xff]  ;;  %v150_v26 = vld [vmem:[#allocation6 + $0x8] sm:$0xff] }
  0x31   :  { %819 = vmatprep.subr.mxu0 %v160_v5  ;;  %872 = vmatpush3.msra.mxu1 %v374_v11  ;;  %v366_v27 = vld [vmem:[#allocation8 + $0x28] sm:$0xff]  ;;  %v149_v29 = vld [vmem:[#allocation6] sm:$0xff]  ;;  %v364_v33 = vld [vmem:[#allocation8 + $0x18] sm:$0xff] }
  0x32   :  { %820 = vmatpush3.msra.mxu0 %v160_v5  ;;  %873 = vmatprep.subr.mxu1 %v373_v13  ;;  %v740_v28 = vld [vmem:[#allocation3 + $0x8] sm:$0xff]   ;;  %v365_v30 = vld [vmem:[#allocation8 + $0x20] sm:$0xff]  ;;  %v741_v34 = vld [vmem:[#allocation3 + $0x10] sm:$0xff]  }
  0x33   :  { %821 = vmatprep.subr.mxu0 %v159_v7  ;;  %874 = vmatpush3.msra.mxu1 %v373_v13  ;;  %v714_v32 = vunpack.c.l.bf16 %v740_v28  ;;  %v715_v35 = vunpack.c.h.bf16 %v740_v28  ;;  %v718_v36 = vunpack.c.l.bf16 %v741_v34  ;;  %v742_v37 = vld [vmem:[#allocation3 + $0x18] sm:$0xff]   ;;  %v719_v38 = vunpack.c.h.bf16 %v741_v34  ;;  %v743_v40 = vld [vmem:[#allocation3 + $0x20] sm:$0xff]   ;;  %v744_v43 = vld [vmem:[#allocation3 + $0x28] sm:$0xff]  }
  0x34   :  { %822 = vmatpush3.msra.mxu0 %v159_v7  ;;  %875 = vmatprep.subr.mxu1 %v372_v15  ;;  %v722_v39 = vunpack.c.l.bf16 %v742_v37  ;;  %v723_v41 = vunpack.c.h.bf16 %v742_v37  ;;  %v726_v42 = vunpack.c.l.bf16 %v743_v40  ;;  %v727_v44 = vunpack.c.h.bf16 %v743_v40  ;;  %v745_v46 = vld [vmem:[#allocation3 + $0x30] sm:$0xff]   ;;  %v746_v49 = vld [vmem:[#allocation3 + $0x38] sm:$0xff]   ;;  %v362_v54 = vld [vmem:[#allocation8 + $0x8] sm:$0xff] }
  0x35   :  { %823 = vmatprep.subr.mxu0 %v158_v10  ;;  %876 = vmatpush3.msra.mxu1 %v372_v15  ;;  %v730_v45 = vunpack.c.l.bf16 %v744_v43  ;;  %v731_v47 = vunpack.c.h.bf16 %v744_v43  ;;  %v734_v48 = vunpack.c.l.bf16 %v745_v46  ;;  %v735_v50 = vunpack.c.h.bf16 %v745_v46  ;;  %v363_v53 = vld [vmem:[#allocation8 + $0x10] sm:$0xff]  ;;  %v361_v55 = vld [vmem:[#allocation8] sm:$0xff]  ;;  %v525_v59 = vld [vmem:[%s1210_s4 + $0x18] sm:$0xff] }
  0x36   :  { %824 = vmatpush3.msra.mxu0 %v158_v10  ;;  %877 = vmatprep.subr.mxu1 %v371_v17  ;;  %v738_v51 = vunpack.c.l.bf16 %v746_v49  ;;  %v739_v52 = vunpack.c.h.bf16 %v746_v49  ;;  %v524_v56 = vld [vmem:[%s1210_s4 + $0x10] sm:$0xff]  ;;  %v522_v57 = vld [vmem:[%s1210_s4] sm:$0xff]  ;;  %v523_v60 = vld [vmem:[%s1210_s4 + $0x8] sm:$0xff] }
  0x37   :  { %825 = vmatprep.subr.mxu0 %v157_v12  ;;  %878 = vmatpush3.msra.mxu1 %v371_v17  ;;  %v527_v61 = vld [vmem:[%s1210_s4 + $0x28] sm:$0xff]  ;;  %v526_v62 = vld [vmem:[%s1210_s4 + $0x20] sm:$0xff]  ;;  %v529_v63 = vld [vmem:[%s1210_s4 + $0x38] sm:$0xff] }
  0x38   :  { %826 = vmatpush3.msra.mxu0 %v157_v12  ;;  %879 = vmatprep.subr.mxu1 %v370_v19  ;;  %v528_v0 = vld [vmem:[%s1210_s4 + $0x30] sm:$0xff]  ;;  %v531_v1 = vld [vmem:[%s1210_s4 + $0x48] sm:$0xff]  ;;  %v530_v2 = vld [vmem:[%s1210_s4 + $0x40] sm:$0xff] }
  0x39   :  { %827 = vmatprep.subr.mxu0 %v156_v14  ;;  %880 = vmatpush3.msra.mxu1 %v370_v19  ;;  %v533_v3 = vld [vmem:[%s1210_s4 + $0x58] sm:$0xff]  ;;  %v532_v4 = vld [vmem:[%s1210_s4 + $0x50] sm:$0xff]  ;;  %v535_v5 = vld [vmem:[%s1210_s4 + $0x68] sm:$0xff] }
  0x3a   :  { %828 = vmatpush3.msra.mxu0 %v156_v14  ;;  %881 = vmatprep.subr.mxu1 %v369_v21  ;;  %v534_v6 = vld [vmem:[%s1210_s4 + $0x60] sm:$0xff]  ;;  %v537_v7 = vld [vmem:[%s1210_s4 + $0x78] sm:$0xff]  ;;  %v536_v8 = vld [vmem:[%s1210_s4 + $0x70] sm:$0xff] }
  0x3b   :  { %829 = vmatprep.subr.mxu0 %v155_v16  ;;  %882 = vmatpush3.msra.mxu1 %v369_v21  ;;  %v69_v10 = vld [vmem:[%s1206_s0] sm:$0xff]  ;;  %v70_v11 = vld [vmem:[%s1206_s0 + $0x8] sm:$0xff]  ;;  %v72_v17 = vld [vmem:[%s1206_s0 + $0x18] sm:$0xff] }
  0x3c   :  { %830 = vmatpush3.msra.mxu0 %v155_v16  ;;  %883 = vmatprep.subr.mxu1 %v368_v23  ;;  %v71_v16 = vld [vmem:[%s1206_s0 + $0x10] sm:$0xff]  ;;  %v77_v34 = vld [vmem:[%s1206_s0 + $0x40] sm:$0xff] }
  0x3d   :  { %831 = vmatprep.subr.mxu0 %v154_v18  ;;  %884 = vmatpush3.msra.mxu1 %v368_v23  ;;  %v74_v23 = vld [vmem:[%s1206_s0 + $0x28] sm:$0xff]  ;;  %v75_v28 = vld [vmem:[%s1206_s0 + $0x30] sm:$0xff]  ;;  %v81_v46 = vld [vmem:[%s1206_s0 + $0x60] sm:$0xff] }
  0x3e   :  { %832 = vmatpush3.msra.mxu0 %v154_v18  ;;  %885 = vmatprep.subr.mxu1 %v367_v25  ;;  %v79_v40 = vld [vmem:[%s1206_s0 + $0x50] sm:$0xff] }
  0x3f   :  { %833 = vmatprep.subr.mxu0 %v153_v20  ;;  %886 = vmatpush3.msra.mxu1 %v367_v25 }
  0x40   :  { %834 = vmatpush3.msra.mxu0 %v153_v20  ;;  %887 = vmatprep.subr.mxu1 %v366_v27 }
  0x41   :  { %835 = vmatprep.subr.mxu0 %v152_v22  ;;  %888 = vmatpush3.msra.mxu1 %v366_v27 }
  0x42   :  { %836 = vmatpush3.msra.mxu0 %v152_v22  ;;  %889 = vmatprep.subr.mxu1 %v365_v30  ;;  %v73_v22 = vld [vmem:[%s1206_s0 + $0x20] sm:$0xff] }
  0x43   :  { %837 = vmatprep.subr.mxu0 %v151_v24  ;;  %890 = vmatpush3.msra.mxu1 %v365_v30 }
  0x44   :  { %838 = vmatpush3.msra.mxu0 %v151_v24  ;;  %891 = vmatprep.subr.mxu1 %v364_v33 }
  0x45   :  { %839 = vmatprep.subr.mxu0 %v150_v26  ;;  %892 = vmatpush3.msra.mxu1 %v364_v33 }
  0x46   :  { %840 = vmatpush3.msra.mxu0 %v150_v26  ;;  %893 = vmatprep.subr.mxu1 %v363_v53 }
  0x47   :  { %841 = vmatprep.subr.mxu0 %v149_v29  ;;  %894 = vmatpush3.msra.mxu1 %v363_v53  ;;  %v84_v53 = vld [vmem:[%s1206_s0 + $0x78] sm:$0xff] }
  0x48   :  { %842 = vmatpush3.msra.mxu0 %v149_v29  ;;  %895 = vmatprep.subr.mxu1 %v362_v54  ;;  %v76_v29 = vld [vmem:[%s1206_s0 + $0x38] sm:$0xff] }
  0x49   :  { %844 = vmatmul.mubr.f32.vlgmr.msra.gmra.mxu0 %v711_v31  ;;  %896 = vmatpush3.msra.mxu1 %v362_v54 }
  0x4a   :  { %846 = vmatprep.mubr.f32.mxu0 %v714_v32  ;;  %897 = vmatprep.subr.mxu1 %v361_v55 }
  0x4b   :  { %898 = vmatpush3.msra.mxu1 %v361_v55  ;;  %550 = vperm.xlu1 %933, %v524_v56  }
  0x4c   :  { %540 = vperm.xlu0 %932, %v522_v57  }
  0x4d   :  { %847 = vmatmul.mubr.f32.gmra.mxu0 %v715_v35  ;;  %v78_v35 = vld [vmem:[%s1206_s0 + $0x48] sm:$0xff] }
  0x4e   :  { %849 = vmatprep.mubr.f32.mxu0 %v718_v36 }
  0x4f   :  { %555 = vperm.xlu1 %933, %v525_v59  }
  0x50   :  { %545 = vperm.xlu0 %932, %v523_v60  }
  0x51   :  { %850 = vmatmul.mubr.f32.gmra.mxu0 %v719_v38 }
  0x52   :  { %852 = vmatprep.mubr.f32.mxu0 %v722_v39 }
  0x53   :  { %565 = vperm.xlu1 %933, %v527_v61  }
  0x54   :  { %560 = vperm.xlu0 %932, %v526_v62  }
  0x55   :  { %853 = vmatmul.mubr.f32.gmra.mxu0 %v723_v41  ;;  %v80_v41 = vld [vmem:[%s1206_s0 + $0x58] sm:$0xff] }
  0x56   :  { %855 = vmatprep.mubr.f32.mxu0 %v726_v42 }
  0x57   :  { %575 = vperm.xlu1 %933, %v529_v63  }
  0x58   :  { %570 = vperm.xlu0 %932, %v528_v0   ;;  %v1182_v0 = vld [vmem:[%s1211_s5] ss:$0 sm:$0xff] }
  0x59   :  { %856 = vmatmul.mubr.f32.gmra.mxu0 %v727_v44 }
  0x5a   :  { %858 = vmatprep.mubr.f32.mxu0 %v730_v45 }
  0x5b   :  { %585 = vperm.xlu1 %933, %v531_v1  }
  0x5c   :  { %580 = vperm.xlu0 %932, %v530_v2  }
  0x5d   :  { %859 = vmatmul.mubr.f32.gmra.mxu0 %v731_v47  ;;  %v82_v47 = vld [vmem:[%s1206_s0 + $0x68] sm:$0xff] }
  0x5e   :  { %861 = vmatprep.mubr.f32.mxu0 %v734_v48 }
  0x5f   :  { %595 = vperm.xlu1 %933, %v533_v3  }
  0x60   :  { %590 = vperm.xlu0 %932, %v532_v4  }
  0x61   :  { %862 = vmatmul.mubr.f32.gmra.mxu0 %v735_v50 }
  0x62   :  { %864 = vmatprep.mubr.f32.mxu0 %v738_v51 }
  0x63   :  { %605 = vperm.xlu1 %933, %v535_v5  }
  0x64   :  { %600 = vperm.xlu0 %932, %v534_v6  }
  0x65   :  { %865 = vmatmul.mubr.f32.gmra.mxu0 %v739_v52  ;;  %v83_v52 = vld [vmem:[%s1206_s0 + $0x70] sm:$0xff]  ;;  %s1028_s0 = smov [#allocation9]  }
  0x66   :  { %s694_s5 = sshll.u32 %s1028_s0, 4  ;;  %s695_s5 = int_to_ptr.vmem [resolvable:$true] %s694_s5 }
  0x67   :  { %615 = vperm.xlu1 %933, %v537_v7   ;;  %s994_s29 = scalar_lea.vmem %s695_s5, 2048  ;;  %p999_p2 = scmp.lt.s32.totalorder %s695_s5, %s695_s5 }
  0x68   :  { %610 = vperm.xlu0 %932, %v536_v8   ;;  %p995_p1 = scmp.ne.s32.totalorder %s695_s5, %s994_s29  ;;  %p1000_p3 = scmp.lt.s32.totalorder %s994_s29, %s994_s29 }
  0x6a   :  { %p1001_p4 = por %p1000_p3, %p999_p2 }
  0x6c   :  { %p1002_p5 = pnand %p1001_p4, %p995_p1 }
  0xc6   :  { %v551_v57 = vpop.permute.xlu1 %550 }
  0xc7   :  { %v541_v58 = vpop.permute.xlu0 %540 }
  0xca   :  { %v556_v59 = vpop.permute.xlu1 %555 }
  0xcb   :  { %v546_v60 = vpop.permute.xlu0 %545 }
  0xce   :  { %v566_v61 = vpop.permute.xlu1 %565 }
  0xcf   :  { %v561_v62 = vpop.permute.xlu0 %560 }
  0xd2   :  { %v576_v5 = vpop.permute.xlu1 %575 }
 0x109   :  { %v845_v9 = vpop.f32.mrf.mxu0 }
 0x10a   :  { %v311_v14 = vadd.f32 %v845_v9, %v70_v11 }
 0x10b   :  { %v231_v12 = vpop.f32.mrf.mxu0 }
 0x10c   :  { %v310_v13 = vadd.f32 %v231_v12, %v69_v10  ;;  %v571_v10 = vpop.permute.xlu0 %570 }
 0x10d   :  { %v848_v15 = vpop.f32.mrf.mxu0 }
 0x10e   :  { %899 = vmatprep.mubr.f32.mxu1 %v310_v13  ;;  %v313_v20 = vadd.f32 %v848_v15, %v72_v17 }
 0x10f   :  { %v241_v18 = vpop.f32.mrf.mxu0  ;;  %900 = vmatmul.mubr.f32.vlgmr.msra.gmra.mxu1 %v311_v14 }
 0x110   :  { %v312_v19 = vadd.f32 %v241_v18, %v71_v16 }
 0x111   :  { %v851_v21 = vpop.f32.mrf.mxu0 }
 0x112   :  { %902 = vmatprep.mubr.f32.mxu1 %v312_v19  ;;  %v315_v26 = vadd.f32 %v851_v21, %v74_v23  ;;  %v586_v19 = vpop.permute.xlu1 %585 }
 0x113   :  { %v251_v24 = vpop.f32.mrf.mxu0  ;;  %903 = vmatmul.mubr.f32.gmra.mxu1 %v313_v20 }
 0x114   :  { %v314_v25 = vadd.f32 %v251_v24, %v73_v22  ;;  %v581_v24 = vpop.permute.xlu0 %580 }
 0x115   :  { %v854_v27 = vpop.f32.mrf.mxu0 }
 0x116   :  { %905 = vmatprep.mubr.f32.mxu1 %v314_v25  ;;  %v317_v32 = vadd.f32 %v854_v27, %v76_v29 }
 0x117   :  { %v261_v30 = vpop.f32.mrf.mxu0  ;;  %906 = vmatmul.mubr.f32.gmra.mxu1 %v315_v26 }
 0x118   :  { %v316_v31 = vadd.f32 %v261_v30, %v75_v28 }
 0x119   :  { %v857_v33 = vpop.f32.mrf.mxu0 }
 0x11a   :  { %908 = vmatprep.mubr.f32.mxu1 %v316_v31  ;;  %v319_v38 = vadd.f32 %v857_v33, %v78_v35  ;;  %v596_v33 = vpop.permute.xlu1 %595 }
 0x11b   :  { %v271_v36 = vpop.f32.mrf.mxu0  ;;  %909 = vmatmul.mubr.f32.gmra.mxu1 %v317_v32 }
 0x11c   :  { %v318_v37 = vadd.f32 %v271_v36, %v77_v34 }
 0x11d   :  { %v860_v39 = vpop.f32.mrf.mxu0 }
 0x11e   :  { %911 = vmatprep.mubr.f32.mxu1 %v318_v37  ;;  %v321_v44 = vadd.f32 %v860_v39, %v80_v41 }
 0x11f   :  { %v281_v42 = vpop.f32.mrf.mxu0  ;;  %912 = vmatmul.mubr.f32.gmra.mxu1 %v319_v38  ;;  %v591_v38 = vpop.permute.xlu0 %590 }
 0x120   :  { %v320_v43 = vadd.f32 %v281_v42, %v79_v40 }
 0x121   :  { %v863_v45 = vpop.f32.mrf.mxu0 }
 0x122   :  { %914 = vmatprep.mubr.f32.mxu1 %v320_v43  ;;  %v323_v50 = vadd.f32 %v863_v45, %v82_v47  ;;  %v606_v47 = vpop.permute.xlu1 %605 }
 0x123   :  { %v291_v48 = vpop.f32.mrf.mxu0  ;;  %915 = vmatmul.mubr.f32.gmra.mxu1 %v321_v44 }
 0x124   :  { %v322_v49 = vadd.f32 %v291_v48, %v81_v46 }
 0x125   :  { %v866_v51 = vpop.f32.mrf.mxu0 }
 0x126   :  { %917 = vmatprep.mubr.f32.mxu1 %v322_v49  ;;  %v325_v56 = vadd.f32 %v866_v51, %v84_v53 }
 0x127   :  { %v301_v54 = vpop.f32.mrf.mxu0  ;;  %918 = vmatmul.mubr.f32.gmra.mxu1 %v323_v50 }
 0x128   :  { %v324_v55 = vadd.f32 %v301_v54, %v83_v52  ;;  %v601_v52 = vpop.permute.xlu0 %600 }
 0x12a   :  { %920 = vmatprep.mubr.f32.mxu1 %v324_v55 }
 0x12b   :  { %921 = vmatmul.mubr.f32.gmra.mxu1 %v325_v56 }
 0x1cf   :  { %v901_v63 = vpop.f32.mrf.mxu1 }
 0x1d0   :  { %v619_v1 = vmul.f32 %v901_v63, %v546_v60 }
 0x1d1   :  { %v443_v2 = vpop.f32.mrf.mxu1 }
 0x1d2   :  { %v642_v3 = vadd.f32 %v1182_v0, %v619_v1  ;;  %v618_v4 = vmul.f32 %v541_v58, %v443_v2 }
 0x1d3   :  { %v904_v6 = vpop.f32.mrf.mxu1 }
 0x1d4   :  { %v658_v7 = vmax.f32 %v642_v3, 0.0  ;;  %v641_v8 = vadd.f32 %v1182_v0, %v618_v4  ;;  %v621_v9 = vmul.f32 %v904_v6, %v556_v59  ;;  %v611_v3 = vpop.permute.xlu0 %610 }
 0x1d5   :  { %v453_v11 = vpop.f32.mrf.mxu1 }
 0x1d6   :  { %674 = vst [vmem:[#allocation9 + $0x8] sm:$0xff] %v658_v7  ;;  %v657_v12 = vmax.f32 %v641_v8, 0.0  ;;  %v644_v13 = vadd.f32 %v1182_v0, %v621_v9  ;;  %v620_v14 = vmul.f32 %v551_v57, %v453_v11 }
 0x1d7   :  { %v907_v15 = vpop.f32.mrf.mxu1 }
 0x1d8   :  { %673 = vst [vmem:[#allocation9] sm:$0xff] %v657_v12  ;;  %v660_v16 = vmax.f32 %v644_v13, 0.0  ;;  %v643_v17 = vadd.f32 %v1182_v0, %v620_v14  ;;  %v623_v18 = vmul.f32 %v907_v15, %v566_v61  ;;  %v616_v61 = vpop.permute.xlu1 %615 }
 0x1d9   :  { %v463_v20 = vpop.f32.mrf.mxu1 }
 0x1da   :  { %676 = vst [vmem:[#allocation9 + $0x18] sm:$0xff] %v660_v16  ;;  %v659_v21 = vmax.f32 %v643_v17, 0.0  ;;  %v646_v22 = vadd.f32 %v1182_v0, %v623_v18  ;;  %v622_v23 = vmul.f32 %v561_v62, %v463_v20 }
 0x1db   :  { %v910_v25 = vpop.f32.mrf.mxu1 }
 0x1dc   :  { %675 = vst [vmem:[#allocation9 + $0x10] sm:$0xff] %v659_v21  ;;  %v662_v26 = vmax.f32 %v646_v22, 0.0  ;;  %v645_v27 = vadd.f32 %v1182_v0, %v622_v23  ;;  %v625_v28 = vmul.f32 %v910_v25, %v576_v5 }
 0x1dd   :  { %v473_v29 = vpop.f32.mrf.mxu1 }
 0x1de   :  { %678 = vst [vmem:[#allocation9 + $0x28] sm:$0xff] %v662_v26  ;;  %v661_v30 = vmax.f32 %v645_v27, 0.0  ;;  %v648_v31 = vadd.f32 %v1182_v0, %v625_v28  ;;  %v624_v32 = vmul.f32 %v571_v10, %v473_v29 }
 0x1df   :  { %v913_v34 = vpop.f32.mrf.mxu1 }
 0x1e0   :  { %677 = vst [vmem:[#allocation9 + $0x20] sm:$0xff] %v661_v30  ;;  %v664_v35 = vmax.f32 %v648_v31, 0.0  ;;  %v647_v36 = vadd.f32 %v1182_v0, %v624_v32  ;;  %v627_v37 = vmul.f32 %v913_v34, %v586_v19 }
 0x1e1   :  { %v483_v39 = vpop.f32.mrf.mxu1 }
 0x1e2   :  { %680 = vst [vmem:[#allocation9 + $0x38] sm:$0xff] %v664_v35  ;;  %v663_v40 = vmax.f32 %v647_v36, 0.0  ;;  %v650_v41 = vadd.f32 %v1182_v0, %v627_v37  ;;  %v626_v42 = vmul.f32 %v581_v24, %v483_v39 }
 0x1e3   :  { %v916_v43 = vpop.f32.mrf.mxu1 }
 0x1e4   :  { %679 = vst [vmem:[#allocation9 + $0x30] sm:$0xff] %v663_v40  ;;  %v666_v44 = vmax.f32 %v650_v41, 0.0  ;;  %v649_v45 = vadd.f32 %v1182_v0, %v626_v42  ;;  %v629_v46 = vmul.f32 %v916_v43, %v596_v33 }
 0x1e5   :  { %v493_v48 = vpop.f32.mrf.mxu1 }
 0x1e6   :  { %682 = vst [vmem:[#allocation9 + $0x48] sm:$0xff] %v666_v44  ;;  %v665_v49 = vmax.f32 %v649_v45, 0.0  ;;  %v652_v50 = vadd.f32 %v1182_v0, %v629_v46  ;;  %v628_v51 = vmul.f32 %v591_v38, %v493_v48 }
 0x1e7   :  { %v919_v53 = vpop.f32.mrf.mxu1 }
 0x1e8   :  { %681 = vst [vmem:[#allocation9 + $0x40] sm:$0xff] %v665_v49  ;;  %v668_v54 = vmax.f32 %v652_v50, 0.0  ;;  %v651_v55 = vadd.f32 %v1182_v0, %v628_v51  ;;  %v631_v56 = vmul.f32 %v919_v53, %v606_v47 }
 0x1e9   :  { %v503_v57 = vpop.f32.mrf.mxu1 }
 0x1ea   :  { %684 = vst [vmem:[#allocation9 + $0x58] sm:$0xff] %v668_v54  ;;  %v667_v58 = vmax.f32 %v651_v55, 0.0  ;;  %v654_v59 = vadd.f32 %v1182_v0, %v631_v56  ;;  %v630_v60 = vmul.f32 %v601_v52, %v503_v57 }
 0x1eb   :  { %v922_v62 = vpop.f32.mrf.mxu1 }
 0x1ec   :  { %683 = vst [vmem:[#allocation9 + $0x50] sm:$0xff] %v667_v58  ;;  %v670_v63 = vmax.f32 %v654_v59, 0.0  ;;  %v653_v1 = vadd.f32 %v1182_v0, %v630_v60  ;;  %v633_v2 = vmul.f32 %v922_v62, %v616_v61 }
 0x1ed   :  { %v513_v4 = vpop.f32.mrf.mxu1 }
 0x1ee   :  { %686 = vst [vmem:[#allocation9 + $0x68] sm:$0xff] %v670_v63  ;;  %v669_v5 = vmax.f32 %v653_v1, 0.0  ;;  %v656_v6 = vadd.f32 %v1182_v0, %v633_v2  ;;  %v632_v7 = vmul.f32 %v611_v3, %v513_v4 }
 0x1f0   :  { %685 = vst [vmem:[#allocation9 + $0x60] sm:$0xff] %v669_v5  ;;  %v672_v8 = vmax.f32 %v656_v6, 0.0  ;;  %v655_v9 = vadd.f32 %v1182_v0, %v632_v7 }
 0x1f2   :  { %688 = vst [vmem:[#allocation9 + $0x78] sm:$0xff] %v672_v8  ;;  %v671_v10 = vmax.f32 %v655_v9, 0.0 }
 0x1f4   :  { %687 = vst [vmem:[#allocation9 + $0x70] sm:$0xff] %v671_v10 }
 0x1f5   :  { %1005 = shalt.err (!%p1002_p5)
}
 0x1f6   :  { %700 = dma.vmem_to_hbm [thread:$0]  %s695_s5, 2048, %s1212_s6, [#allocation5], %s1021_s24, %s1021_s24, %s1022_s25  }
 0x1f7   :  { %1018 = dma.done.wait [#allocation5], 2048  }
 0x1f8   :  { %1019 = vsyncadd [#allocation5], 4294965248 }
 0x1f9   :  { %704 = vsyncpa [#allocation4], 1 }
 0x1fa   :  { %705 = vsyncpa [#allocation7], 1 }
 0x1fb   :  { %706 = vsyncpa [#allocation5], 1 }

</bundles_post_ra>
